<compile_context>
chip_gen: v5e
topology: v5e:2x2
jax: 0.10.0
libtpu: 0.0.40
codegen_flags: <defaults>
</compile_context>

<pallas_src>
import jax
import jax.numpy as jnp
from jax.experimental import pallas as pl
from jax.experimental.pallas import tpu as pltpu


def _linear_block_kernel(x_ref, w1_ref, b1_ref, w2_ref, b2_ref, o_ref):
    # x_ref:  (TILE_N, C_in)   current row tile
    # w1_ref: (C_in,  C_out)   resident across grid
    # b1_ref: (1,     C_out)
    # w2_ref: (C_out, C_out)
    # b2_ref: (1,     C_out)
    # o_ref:  (TILE_N, C_out)
    x = x_ref[...].astype(jnp.float32)
    w1 = w1_ref[...].astype(jnp.float32)
    b1 = b1_ref[...].astype(jnp.float32)
    w2 = w2_ref[...].astype(jnp.float32)
    b2 = b2_ref[...].astype(jnp.float32)

    h = jnp.dot(x, w1, preferred_element_type=jnp.float32) + b1
    h = jnp.maximum(h, 0.0)                      # ReLU #1 (VPU)
    y = jnp.dot(h, w2, preferred_element_type=jnp.float32) + b2
    y = jnp.maximum(y, 0.0)                      # ReLU #2 (VPU)

    o_ref[...] = y.astype(o_ref.dtype)


def linear_block(x, w1, b1, w2, b2, *, tile_n=256):
    """Fused LinearBlock forward in a single Pallas TPU kernel.

    x : (..., C_in)   activations (any leading dims), native dtype
    w1: (C_in, C_out) first Linear weight   (transposed PyTorch layout)
    b1: (C_out,)      first Linear bias
    w2: (C_out, C_out) second Linear weight (transposed PyTorch layout)
    b2: (C_out,)      second Linear bias
    returns: (..., C_out) in x.dtype
    """
    orig_lead = x.shape[:-1]
    c_in = x.shape[-1]
    c_out = w1.shape[1]

    x2 = x.reshape(-1, c_in)
    n = x2.shape[0]

    # Row tile: multiple of 8 (f32 sublane), capped so the double-buffered
    # input/output tiles stay tiny relative to any generation's VMEM budget.
    n_aligned = ((n + 7) // 8) * 8
    tile_n = min(tile_n, n_aligned)
    n_pad = ((n + tile_n - 1) // tile_n) * tile_n
    if n_pad != n:
        x2 = jnp.pad(x2, ((0, n_pad - n), (0, 0)))

    grid = (n_pad // tile_n,)
    b1r = b1.reshape(1, c_out)
    b2r = b2.reshape(1, c_out)

    out = pl.pallas_call(
        _linear_block_kernel,
        out_shape=jax.ShapeDtypeStruct((n_pad, c_out), x.dtype),
        grid_spec=pltpu.PrefetchScalarGridSpec(
            num_scalar_prefetch=0,
            grid=grid,
            in_specs=[
                pl.BlockSpec((tile_n, c_in), lambda i: (i, 0)),   # row tile
                pl.BlockSpec((c_in, c_out), lambda i: (0, 0)),    # W1 resident
                pl.BlockSpec((1, c_out), lambda i: (0, 0)),       # b1 resident
                pl.BlockSpec((c_out, c_out), lambda i: (0, 0)),   # W2 resident
                pl.BlockSpec((1, c_out), lambda i: (0, 0)),       # b2 resident
            ],
            out_specs=pl.BlockSpec((tile_n, c_out), lambda i: (i, 0)),
        ),
        compiler_params=pltpu.CompilerParams(
            # Independent row blocks -> shard across both TCs on v7x,
            # harmless on v5e/v6e.
            dimension_semantics=("parallel",),
        ),
    )(x2, w1, b1r, w2, b2r)

    if n_pad != n:
        out = out[:n]
    return out.reshape(*orig_lead, c_out)


if __name__ == "__main__":
    key = jax.random.PRNGKey(0)
    k_x, k_w1, k_b1, k_w2, k_b2 = jax.random.split(key, 5)

    # Small shapes consistent with the module: batch=16, in=32, out=64.
    N, C_IN, C_OUT = 16, 32, 64

    x = jax.random.normal(k_x, (N, C_IN), dtype=jnp.float32)
    # PyTorch nn.Linear stores weight as (out, in); we pass the transposed
    # (in, out) layout the kernel expects.
    w1 = jax.random.normal(k_w1, (C_IN, C_OUT), dtype=jnp.float32) * 0.1
    b1 = jax.random.normal(k_b1, (C_OUT,), dtype=jnp.float32) * 0.1
    w2 = jax.random.normal(k_w2, (C_OUT, C_OUT), dtype=jnp.float32) * 0.1
    b2 = jax.random.normal(k_b2, (C_OUT,), dtype=jnp.float32) * 0.1

    y = linear_block(x, w1, b1, w2, b2)
    jax.block_until_ready(y)

    # Plain-JAX reference (same math as the PyTorch module's forward).
    h_ref = jnp.maximum(x @ w1 + b1, 0.0)
    y_ref = jnp.maximum(h_ref @ w2 + b2, 0.0)
    assert y.shape == (N, C_OUT), y.shape
    assert jnp.allclose(y, y_ref, atol=1e-5, rtol=1e-5), (
        jnp.max(jnp.abs(y - y_ref)))

    print("KERNEL_OK")
</pallas_src>

<mosaic_0001>
module attributes {stable_mosaic.version = 11 : i64} {
  func.func @_linear_block_kernel(%arg0: i32, %arg1: memref<16x32xf32, #tpu.memory_space<vmem>>, %arg2: memref<32x64xf32, #tpu.memory_space<vmem>>, %arg3: memref<1x64xf32, #tpu.memory_space<vmem>>, %arg4: memref<64x64xf32, #tpu.memory_space<vmem>>, %arg5: memref<1x64xf32, #tpu.memory_space<vmem>>, %arg6: memref<16x64xf32, #tpu.memory_space<vmem>>) attributes {dimension_semantics = [#tpu.dimension_semantics<parallel>], iteration_bounds = array<i64: 1>, scalar_prefetch = 0 : i64, scratch_operands = 0 : i64, tpu.core_type = #tpu.core_type<tc>, window_params = [{transform_indices = @transform_0, window_bounds = array<i64: 16, 32>}, {pipeline_mode = #tpu.pipeline_mode<synchronous>, transform_indices = @transform_1, window_bounds = array<i64: 32, 64>}, {pipeline_mode = #tpu.pipeline_mode<synchronous>, transform_indices = @transform_2, window_bounds = array<i64: 1, 64>}, {pipeline_mode = #tpu.pipeline_mode<synchronous>, transform_indices = @transform_3, window_bounds = array<i64: 64, 64>}, {pipeline_mode = #tpu.pipeline_mode<synchronous>, transform_indices = @transform_4, window_bounds = array<i64: 1, 64>}, {transform_indices = @transform_5, window_bounds = array<i64: 16, 64>}]} {
    %c0 = arith.constant 0 : index
    %c0_0 = arith.constant 0 : index
    %0 = vector.load %arg1[%c0, %c0_0] : memref<16x32xf32, #tpu.memory_space<vmem>>, vector<16x32xf32>
    %c0_1 = arith.constant 0 : index
    %c0_2 = arith.constant 0 : index
    %1 = vector.load %arg2[%c0_1, %c0_2] : memref<32x64xf32, #tpu.memory_space<vmem>>, vector<32x64xf32>
    %c0_3 = arith.constant 0 : index
    %c0_4 = arith.constant 0 : index
    %2 = vector.load %arg3[%c0_3, %c0_4] : memref<1x64xf32, #tpu.memory_space<vmem>>, vector<1x64xf32>
    %c0_5 = arith.constant 0 : index
    %c0_6 = arith.constant 0 : index
    %3 = vector.load %arg4[%c0_5, %c0_6] : memref<64x64xf32, #tpu.memory_space<vmem>>, vector<64x64xf32>
    %c0_7 = arith.constant 0 : index
    %c0_8 = arith.constant 0 : index
    %4 = vector.load %arg5[%c0_7, %c0_8] : memref<1x64xf32, #tpu.memory_space<vmem>>, vector<1x64xf32>
    %cst = arith.constant dense<0.000000e+00> : vector<16x64xf32>
    %5 = tpu.matmul %0, %1, %cst {dimension_numbers = #tpu.dot_dimension_numbers<[1], [0], [0], [1], [0, 0, 1, 1], [], []>} : vector<16x32xf32>, vector<32x64xf32>, vector<16x64xf32> -> vector<16x64xf32>
    %6 = vector.broadcast %2 : vector<1x64xf32> to vector<16x64xf32>
    %7 = arith.addf %5, %6 : vector<16x64xf32>
    %cst_9 = arith.constant 0.000000e+00 : f32
    %8 = vector.broadcast %cst_9 : f32 to vector<16x64xf32>
    %9 = arith.maximumf %7, %8 : vector<16x64xf32>
    %cst_10 = arith.constant dense<0.000000e+00> : vector<16x64xf32>
    %10 = tpu.matmul %9, %3, %cst_10 {dimension_numbers = #tpu.dot_dimension_numbers<[1], [0], [0], [1], [0, 0, 1, 1], [], []>} : vector<16x64xf32>, vector<64x64xf32>, vector<16x64xf32> -> vector<16x64xf32>
    %11 = vector.broadcast %4 : vector<1x64xf32> to vector<16x64xf32>
    %12 = arith.addf %10, %11 : vector<16x64xf32>
    %cst_11 = arith.constant 0.000000e+00 : f32
    %13 = vector.broadcast %cst_11 : f32 to vector<16x64xf32>
    %14 = arith.maximumf %12, %13 : vector<16x64xf32>
    %c0_12 = arith.constant 0 : index
    %c0_13 = arith.constant 0 : index
    %15 = vector.load %arg6[%c0_12, %c0_13] : memref<16x64xf32, #tpu.memory_space<vmem>>, vector<16x64xf32>
    tpu.vector_store %arg6[%c0_12, %c0_13], %14 {strides = array<i32>} : memref<16x64xf32, #tpu.memory_space<vmem>>, vector<16x64xf32>,
    return
  }
  func.func @transform_0(%arg0: i32) -> (i32, i32) {
    %c0_i32 = arith.constant 0 : i32
    %c0_i32_0 = arith.constant 0 : i32
    return %arg0, %c0_i32 : i32, i32
  }
  func.func @transform_1(%arg0: i32) -> (i32, i32) {
    %c0_i32 = arith.constant 0 : i32
    %c0_i32_0 = arith.constant 0 : i32
    %c0_i32_1 = arith.constant 0 : i32
    return %c0_i32, %c0_i32_0 : i32, i32
  }
  func.func @transform_2(%arg0: i32) -> (i32, i32) {
    %c0_i32 = arith.constant 0 : i32
    %c0_i32_0 = arith.constant 0 : i32
    %c0_i32_1 = arith.constant 0 : i32
    return %c0_i32, %c0_i32_0 : i32, i32
  }
  func.func @transform_3(%arg0: i32) -> (i32, i32) {
    %c0_i32 = arith.constant 0 : i32
    %c0_i32_0 = arith.constant 0 : i32
    %c0_i32_1 = arith.constant 0 : i32
    return %c0_i32, %c0_i32_0 : i32, i32
  }
  func.func @transform_4(%arg0: i32) -> (i32, i32) {
    %c0_i32 = arith.constant 0 : i32
    %c0_i32_0 = arith.constant 0 : i32
    %c0_i32_1 = arith.constant 0 : i32
    return %c0_i32, %c0_i32_0 : i32, i32
  }
  func.func @transform_5(%arg0: i32) -> (i32, i32) {
    %c0_i32 = arith.constant 0 : i32
    %c0_i32_0 = arith.constant 0 : i32
    return %arg0, %c0_i32 : i32, i32
  }
}

</mosaic_0001>

<bundles_post_ra>
// kernel: tpu_custom_call.1
= control target key start
LH: loop header
LB: loop body
LE: loop exit
PB: predicated region body
PF: predicated region fallthrough
CT: control target
= control target key end

     0   :  { %10 = vsyncpa [#allocation3], 0  ;;  %s372_s0 = inlined_call_operand.hbm [shape: f32[16,32], index: 0, kind: input, shape index: {}]   ;;  %s373_s1 = inlined_call_operand.hbm [shape: f32[32,64], index: 1, kind: input, shape index: {}]   ;;  %s374_s2 = inlined_call_operand.vmem [shape: f32[1,64], index: 2, kind: input, shape index: {}]   ;;  %s375_s3 = inlined_call_operand.hbm [shape: f32[64,64], index: 3, kind: input, shape index: {}]   ;;  %s376_s4 = inlined_call_operand.vmem [shape: f32[1,64], index: 4, kind: input, shape index: {}]   ;;  %s377_s5 = inlined_call_operand.hbm [shape: f32[16,64], index: 5, kind: output, shape index: {}]  }
   0x1   :  { %11 = vsyncpa [#allocation6], 0 }
   0x2   :  { %12 = vsyncpa [#allocation4], 0  ;;  %s30_s20 = sshll.u32 %s373_s1, 4  ;;  %s302_s21 = smov [#allocation5]   ;;  %s31_s20 = int_to_ptr.hbm [resolvable:$true] %s30_s20 }
   0x3   :  { %s32_s22 = sshll.u32 %s302_s21, 4  ;;  %s17_s25 = sshll.u32 %s372_s0, 4  ;;  %s33_s22 = int_to_ptr.vmem [resolvable:$true] %s32_s22  ;;  %s18_s25 = int_to_ptr.hbm [resolvable:$true] %s17_s25 }
   0x4   :  { %s303_s26 = smov 128   ;;  %s304_s27 = smov 8  }
   0x5   :  { %38 = dma.hbm_to_vmem [thread:$0]  %s31_s20, 512, %s33_s22, [#allocation6], %s303_s26, %s303_s26, %s304_s27  }
   0x6   :  { %s305_s28 = smov [#allocation2]   ;;  %s45_s1 = sshll.u32 %s375_s3, 4  ;;  %s46_s1 = int_to_ptr.hbm [resolvable:$true] %s45_s1 }
   0x7   :  { %s19_s29 = sshll.u32 %s305_s28, 4  ;;  %s306_s0 = smov [#allocation7]   ;;  %s20_s29 = int_to_ptr.vmem [resolvable:$true] %s19_s29 }
   0x8   :  { %25 = dma.hbm_to_vmem [thread:$0]  %s18_s25, 256, %s20_s29, [#allocation3], %s303_s26, %s303_s26, %s304_s27  }
   0x9   :  { %s47_s7 = sshll.u32 %s306_s0, 4  ;;  %s48_s7 = int_to_ptr.vmem [resolvable:$true] %s47_s7 }
   0xa   :  { %53 = dma.hbm_to_vmem [thread:$0]  %s46_s1, 1024, %s48_s7, [#allocation6], %s303_s26, %s303_s26, %s304_s27  }
   0xb   :  { %296 = dma.done.wait [#allocation3], 256  }
   0xc   :  { %297 = vsyncadd [#allocation3], 4294967040 }
   0xd   :  { %298 = dma.done.wait [#allocation6], 1536  }
   0xe   :  { %299 = vsyncadd [#allocation6], 4294965760  ;;  %v73_v0 = vld [vmem:[#allocation5 + $0x18] sm:$0xff]  ;;  %v72_v1 = vld [vmem:[#allocation5 + $0x10] sm:$0xff]  ;;  %vm87_vm0 = vcmask 261120   ;;  %vm122_vm1 = vcmask 523264  }
   0xf   :  { %180 = vmatpush.msra.mxu3 %v73_v0  ;;  %106 = vmatpush.msra.mxu0 %v73_v0  ;;  %v71_v2 = vld [vmem:[#allocation5 + $0x8] sm:$0xff]  ;;  %v82_v3 = vld [vmem:[#allocation7 + $0x38] sm:$0xff]  ;;  %v81_v4 = vld [vmem:[#allocation7 + $0x30] sm:$0xff]  ;;  %s162_s14 = sshll.u32 %s377_s5, 4  ;;  %s163_s14 = int_to_ptr.hbm [resolvable:$true] %s162_s14 }
  0x10   :  { %v70_v5 = vld [vmem:[#allocation5] sm:$0xff]  ;;  %184 = vmatpush.msra.mxu2 %v82_v3  ;;  %137 = vmatpush.msra.mxu1 %v82_v3  ;;  %v69_v6 = vld [vmem:[#allocation2 + $0x8] sm:$0xff]  ;;  %v68_v7 = vld [vmem:[#allocation2] sm:$0xff] }
  0x11   :  { %181 = vmatpush.msra.mxu3 %v72_v1  ;;  %107 = vmatpush.msra.mxu0 %v72_v1  ;;  %v80_v8 = vld [vmem:[#allocation7 + $0x28] sm:$0xff]  ;;  %v79_v9 = vld [vmem:[#allocation7 + $0x20] sm:$0xff]  ;;  %v78_v10 = vld [vmem:[#allocation7 + $0x18] sm:$0xff] }
  0x12   :  { %185 = vmatpush.msra.mxu2 %v81_v4  ;;  %138 = vmatpush.msra.mxu1 %v81_v4  ;;  %v77_v11 = vld [vmem:[#allocation7 + $0x10] sm:$0xff]  ;;  %v76_v12 = vld [vmem:[#allocation7 + $0x8] sm:$0xff]  ;;  %v75_v13 = vld [vmem:[#allocation7] sm:$0xff] }
  0x13   :  { %182 = vmatpush.msra.mxu3 %v71_v2  ;;  %108 = vmatpush.msra.mxu0 %v71_v2  ;;  %v198_v14 = vld [vmem:[%s374_s2] ss:$0 sm:$0xff]  ;;  %s307_s2 = smov [#allocation8]  }
  0x14   :  { %186 = vmatpush.msra.mxu2 %v80_v8  ;;  %139 = vmatpush.msra.mxu1 %v80_v8  ;;  %v199_v21 = vld [vmem:[%s376_s4] ss:$0 sm:$0xff]  ;;  %s160_s11 = sshll.u32 %s307_s2, 4  ;;  %s161_s11 = int_to_ptr.vmem [resolvable:$true] %s160_s11 }
  0x15   :  { %183 = vmatpush.msra.mxu3 %v70_v5  ;;  %109 = vmatpush.msra.mxu0 %v70_v5 }
  0x16   :  { %177 = vmatmul.msk.f32.vlgmr.msra.gmra.mxu3 %vm87_vm0, %v69_v6  ;;  %176 = vmatmul.msk.f32.vlgmr.msra.gmra.mxu0 %vm87_vm0, %v68_v7 }
  0x17   :  { %187 = vmatpush.msra.mxu2 %v79_v9  ;;  %140 = vmatpush.msra.mxu1 %v79_v9 }
  0x19   :  { %188 = vmatpush.msra.mxu2 %v78_v10  ;;  %141 = vmatpush.msra.mxu1 %v78_v10 }
  0x1b   :  { %189 = vmatpush.msra.mxu2 %v77_v11  ;;  %142 = vmatpush.msra.mxu1 %v77_v11 }
  0x1d   :  { %190 = vmatpush.msra.mxu2 %v76_v12  ;;  %143 = vmatpush.msra.mxu1 %v76_v12 }
  0x1f   :  { %191 = vmatpush.msra.mxu2 %v75_v13  ;;  %144 = vmatpush.msra.mxu1 %v75_v13 }
  0x93   :  { %v111_v15 = vpop.f32.mrf.mxu0 }
  0x94   :  { %v112_v16 = vadd.f32 %v198_v14, %v111_v15 }
  0x96   :  { %v117_v17 = vmax.f32 %v112_v16, 0.0 }
  0x98   :  { %178 = vmatmul.msk.f32.vlgmr.msra.gmra.mxu1 %vm122_vm1, %v117_v17 }
  0x99   :  { %v114_v18 = vpop.f32.mrf.mxu3 }
  0x9a   :  { %v115_v19 = vadd.f32 %v198_v14, %v114_v18 }
  0x9c   :  { %v118_v20 = vmax.f32 %v115_v19, 0.0 }
  0x9e   :  { %179 = vmatmul.msk.f32.vlgmr.msra.gmra.mxu2 %vm122_vm1, %v118_v20 }
 0x115   :  { %v146_v22 = vpop.f32.mrf.mxu1 }
 0x116   :  { %v147_v23 = vadd.f32 %v199_v21, %v146_v22 }
 0x118   :  { %v152_v24 = vmax.f32 %v147_v23, 0.0 }
 0x11a   :  { %154 = vst.msk [vmem:[#allocation8] sm:$0xff] %vm122_vm1, %v152_v24 }
 0x121   :  { %v149_v25 = vpop.f32.mrf.mxu2 }
 0x122   :  { %v150_v26 = vadd.f32 %v199_v21, %v149_v25 }
 0x124   :  { %v153_v27 = vmax.f32 %v150_v26, 0.0 }
 0x126   :  { %155 = vst.msk [vmem:[#allocation8 + $0x8] sm:$0xff] %vm122_vm1, %v153_v27 }
 0x127   :  { %168 = dma.vmem_to_hbm [thread:$0]  %s161_s11, 256, %s163_s14, [#allocation4], %s303_s26, %s303_s26, %s304_s27  }
 0x128   :  { %300 = dma.done.wait [#allocation4], 256  }
 0x129   :  { %301 = vsyncadd [#allocation4], 4294967040 }
 0x12a   :  { %173 = vsyncpa [#allocation3], 1 }
 0x12b   :  { %174 = vsyncpa [#allocation6], 1 }
 0x12c   :  { %175 = vsyncpa [#allocation4], 1 }

</bundles_post_ra>
